<compile_context>
chip_gen: v5e
topology: v5e:2x2
jax: 0.10.0
libtpu: 0.0.40
codegen_flags: <defaults>
</compile_context>

<pallas_src>
import numpy as np
import jax
import jax.numpy as jnp
from jax.experimental import pallas as pl
from jax.experimental.pallas import tpu as pltpu


def tokenizer_kernel(x_num_ref, x_cat_ref, w_num_ref, w_cat_ref, bias_ref, out_ref):
    """One batch tile.

    x_num_ref : (TB, d_num)          f32  numeric features
    x_cat_ref : (TB, n_cat)          i32  cat indices (offsets + c*V already folded in)
    w_num_ref : (d_num, K*d_token)   f32  block-diagonal numeric table
    w_cat_ref : (n_cat*V, K*d_token) f32  block-structured embedding table
    bias_ref  : (1, K*d_token)       f32  flattened bias
    out_ref   : (TB, K*d_token)      f32  flattened output block (== (TB,K,d_token))
    """
    tb = x_num_ref.shape[0]
    n_cat = x_cat_ref.shape[1]
    cv = w_cat_ref.shape[0]                                      # n_cat * V

    # all-column one-hot over the concatenated (n_cat*V) index space: one compare
    # per categorical column (indices were pre-shifted by offsets[c] + c*V).
    iota_cv = jax.lax.broadcasted_iota(jnp.int32, (tb, cv), 1)   # lane-dim iota
    onehot = (iota_cv == x_cat_ref[:, 0:1]).astype(jnp.float32)
    for c in range(1, n_cat):                                    # static unroll, n_cat small
        onehot = onehot + (iota_cv == x_cat_ref[:, c:c + 1]).astype(jnp.float32)

    # numeric tokens + categorical tokens as two MXU matmuls into the flat layout.
    out = jnp.dot(x_num_ref[...], w_num_ref[...], preferred_element_type=jnp.float32)
    out = out + jnp.dot(onehot, w_cat_ref[...], preferred_element_type=jnp.float32)

    # single full-block store; bias added once for the whole tile.
    out_ref[...] = out + bias_ref[...]


def _pick_batch_tile(batch):
    """Largest multiple-of-8 tile dividing B, preferring grid length >= 2 (v7x 2 TCs)."""
    cands = (4096, 2048, 1024, 512, 256, 128, 64, 32, 16, 8)
    for cand in cands:
        if batch % cand == 0 and batch // cand >= 2:
            return cand
    for cand in cands:
        if batch % cand == 0:
            return cand
    return batch  # odd / tiny batch: single full-batch block


def build_tokenizer_tables(weight, emb, category_offsets, bias):
    """Precompute the block-structured matmul tables (normally done once at init)."""
    d_num, d_token = weight.shape
    V = emb.shape[0]
    n_cat = category_offsets.shape[0]
    K = d_num + n_cat
    KD = K * d_token

    w_num = jnp.zeros((d_num, KD), jnp.float32)
    for f in range(d_num):
        w_num = w_num.at[f, f * d_token:(f + 1) * d_token].set(
            weight[f].astype(jnp.float32))

    w_cat = jnp.zeros((n_cat * V, KD), jnp.float32)
    for c in range(n_cat):
        w_cat = w_cat.at[c * V:(c + 1) * V,
                         (d_num + c) * d_token:(d_num + c + 1) * d_token].set(
            emb.astype(jnp.float32))

    bias_flat = bias.astype(jnp.float32).reshape(1, KD)
    # per-column shift: global vocab offset + c*V slot in the concatenated one-hot space
    cat_shift = (category_offsets.astype(jnp.int32)
                 + jnp.arange(n_cat, dtype=jnp.int32) * V)
    return w_num, w_cat, bias_flat, cat_shift


def tokenizer_forward(x_num, x_cat, weight, emb, category_offsets, bias, *, tb=None):
    """x_num: (B, 1, d_num) float, x_cat: (B, 1, n_cat) int -> (B, 1, K, d_token)."""
    B = x_num.shape[0]
    d_num, d_token = weight.shape
    n_cat = category_offsets.shape[0]
    V = emb.shape[0]
    K = d_num + n_cat
    KD = K * d_token

    w_num, w_cat, bias_flat, cat_shift = build_tokenizer_tables(
        weight, emb, category_offsets, bias)

    if tb is None:
        tb = _pick_batch_tile(B)
    assert B % tb == 0, (B, tb)
    grid = (B // tb,)

    x_num2 = x_num.reshape(B, d_num).astype(jnp.float32)
    x_cat2 = x_cat.reshape(B, n_cat).astype(jnp.int32) + cat_shift[None, :]

    out_flat = pl.pallas_call(
        tokenizer_kernel,
        out_shape=jax.ShapeDtypeStruct((B, KD), jnp.float32),
        grid=grid,
        in_specs=[
            pl.BlockSpec((tb, d_num), lambda i: (i, 0)),        # batch-tiled
            pl.BlockSpec((tb, n_cat), lambda i: (i, 0)),        # batch-tiled
            pl.BlockSpec((d_num, KD), lambda i: (0, 0)),        # resident table
            pl.BlockSpec((n_cat * V, KD), lambda i: (0, 0)),    # resident table
            pl.BlockSpec((1, KD), lambda i: (0, 0)),            # resident bias
        ],
        out_specs=pl.BlockSpec((tb, KD), lambda i: (i, 0)),
        compiler_params=pltpu.CompilerParams(
            dimension_semantics=("parallel",),                  # v7x 2-TC sharding
            vmem_limit_bytes=40 * 1024 * 1024),                 # room for tb=4096 tiles
    )(x_num2, x_cat2, w_num, w_cat, bias_flat)

    # (B, K*d_token) row-major == (B, 1, K, d_token) row-major: free reshape, no transpose.
    return out_flat.reshape(B, 1, K, d_token)


def ref_forward(x_num, x_cat, weight, emb, category_offsets, bias):
    """Pure-JAX replica of the PyTorch forward, for correctness checking."""
    x_cat = x_cat.astype(jnp.int32)
    x = weight.T[None, :, :] * x_num                   # (B, d_token, d_num)
    x = x[:, None]                                     # (B, 1, d_token, d_num)
    x = jnp.transpose(x, (0, 1, 3, 2))                 # (B, 1, d_num, d_token)
    e = emb[x_cat + category_offsets[None, :]]         # (B, 1, n_cat, d_token)
    x = jnp.concatenate([x, e], axis=2)                # (B, 1, K, d_token)
    x = x + bias[None]                                 # broadcast bias (K, d_token)
    return x


if __name__ == "__main__":
    # ---- module hyper-params (small, consistent with the torch __init__) ----
    d_numerical = 6
    categories = [3, 3, 4]              # phase1/phase2 copy needs equal, in-bounds slices
    d_token = 32
    B = 16                              # batch; tb=8 -> grid=(2,) exercises pipelining
    phase1_num, phase2_num = [0], [1]
    phase1_cat, phase2_cat = [0], [1]   # categories[0]==categories[1]==3, slices fit in V

    n_cat = len(categories)
    V = sum(categories) + 1
    d_bias = d_numerical + n_cat

    key = jax.random.PRNGKey(0)
    k_emb, k_w, k_b, k_xn, k_xc = jax.random.split(key, 5)

    # deterministic "kaiming-uniform-like" init (synthetic, no checkpoint load).
    # np.array(...) makes WRITABLE host copies.
    emb_np = np.array(jax.random.uniform(k_emb, (V, d_token), jnp.float32, -0.5, 0.5))
    weight_np = np.array(jax.random.uniform(k_w, (d_numerical, d_token), jnp.float32, -0.5, 0.5))
    bias = jnp.asarray(jax.random.uniform(k_b, (d_bias, d_token), jnp.float32, -0.5, 0.5))

    # replicate the phase1/phase2 row-copy logic from __init__
    csum = np.cumsum(categories)
    for col in range(len(phase1_cat)):
        ind1 = int(csum[phase1_cat[col]]) - 1
        ind2 = int(csum[phase2_cat[col]]) - 1
        emb_np[ind1:ind1 + categories[phase1_cat[col]], :] = \
            emb_np[ind2:ind2 + categories[phase2_cat[col]], :]
    for col in range(len(phase1_num)):
        weight_np[phase1_num[col], :] = weight_np[phase2_num[col], :]
    emb = jnp.asarray(emb_np)
    weight = jnp.asarray(weight_np)

    category_offsets = jnp.asarray(
        np.concatenate([[0], np.cumsum(categories)[:-1]]), dtype=jnp.int32)

    # ---- inputs ----
    x_num = jax.random.normal(k_xn, (B, 1, d_numerical), jnp.float32)
    ck = jax.random.split(k_xc, n_cat)
    x_cat = jnp.concatenate(
        [jax.random.randint(ck[i], (B, 1), 0, categories[i]) for i in range(n_cat)],
        axis=1).reshape(B, 1, n_cat).astype(jnp.int32)

    # ---- run kernel + check against pure-JAX reference ----
    out = tokenizer_forward(x_num, x_cat, weight, emb, category_offsets, bias, tb=8)
    out = jax.block_until_ready(out)
    ref = ref_forward(x_num, x_cat, weight, emb, category_offsets, bias)

    assert out.shape == (B, 1, d_numerical + n_cat, d_token), out.shape
    np.testing.assert_allclose(np.asarray(out), np.asarray(ref), rtol=1e-5, atol=1e-5)
    print("KERNEL_OK")
</pallas_src>

<mosaic_0001>
module attributes {stable_mosaic.version = 11 : i64} {
  func.func @tokenizer_kernel(%arg0: i32, %arg1: memref<8x6xf32, #tpu.memory_space<vmem>>, %arg2: memref<8x3xi32, #tpu.memory_space<vmem>>, %arg3: memref<6x288xf32, #tpu.memory_space<vmem>>, %arg4: memref<33x288xf32, #tpu.memory_space<vmem>>, %arg5: memref<1x288xf32, #tpu.memory_space<vmem>>, %arg6: memref<8x288xf32, #tpu.memory_space<vmem>>) attributes {dimension_semantics = [#tpu.dimension_semantics<parallel>], iteration_bounds = array<i64: 2>, scalar_prefetch = 0 : i64, scratch_operands = 0 : i64, tpu.core_type = #tpu.core_type<tc>, window_params = [{transform_indices = @transform_0, window_bounds = array<i64: 8, 6>}, {transform_indices = @transform_1, window_bounds = array<i64: 8, 3>}, {pipeline_mode = #tpu.pipeline_mode<synchronous>, transform_indices = @transform_2, window_bounds = array<i64: 6, 288>}, {pipeline_mode = #tpu.pipeline_mode<synchronous>, transform_indices = @transform_3, window_bounds = array<i64: 33, 288>}, {pipeline_mode = #tpu.pipeline_mode<synchronous>, transform_indices = @transform_4, window_bounds = array<i64: 1, 288>}, {transform_indices = @transform_5, window_bounds = array<i64: 8, 288>}]} {
    %0 = tpu.iota {dimensions = array<i32: 1>} : vector<8x33xi32>
    %c0 = arith.constant 0 : index
    %c0_0 = arith.constant 0 : index
    %1 = vector.load %arg2[%c0, %c0_0] : memref<8x3xi32, #tpu.memory_space<vmem>>, vector<8x1xi32>
    %2 = vector.broadcast %1 : vector<8x1xi32> to vector<8x33xi32>
    %3 = arith.cmpi eq, %0, %2 : vector<8x33xi32>
    %4 = arith.extui %3 : vector<8x33xi1> to vector<8x33xi32>
    %5 = arith.sitofp %4 : vector<8x33xi32> to vector<8x33xf32>
    %c0_1 = arith.constant 0 : index
    %c1 = arith.constant 1 : index
    %6 = vector.load %arg2[%c0_1, %c1] : memref<8x3xi32, #tpu.memory_space<vmem>>, vector<8x1xi32>
    %7 = vector.broadcast %6 : vector<8x1xi32> to vector<8x33xi32>
    %8 = arith.cmpi eq, %0, %7 : vector<8x33xi32>
    %9 = arith.extui %8 : vector<8x33xi1> to vector<8x33xi32>
    %10 = arith.sitofp %9 : vector<8x33xi32> to vector<8x33xf32>
    %11 = arith.addf %5, %10 : vector<8x33xf32>
    %c0_2 = arith.constant 0 : index
    %c2 = arith.constant 2 : index
    %12 = vector.load %arg2[%c0_2, %c2] : memref<8x3xi32, #tpu.memory_space<vmem>>, vector<8x1xi32>
    %13 = vector.broadcast %12 : vector<8x1xi32> to vector<8x33xi32>
    %14 = arith.cmpi eq, %0, %13 : vector<8x33xi32>
    %15 = arith.extui %14 : vector<8x33xi1> to vector<8x33xi32>
    %16 = arith.sitofp %15 : vector<8x33xi32> to vector<8x33xf32>
    %17 = arith.addf %11, %16 : vector<8x33xf32>
    %c0_3 = arith.constant 0 : index
    %c0_4 = arith.constant 0 : index
    %18 = vector.load %arg1[%c0_3, %c0_4] : memref<8x6xf32, #tpu.memory_space<vmem>>, vector<8x6xf32>
    %c0_5 = arith.constant 0 : index
    %c0_6 = arith.constant 0 : index
    %19 = vector.load %arg3[%c0_5, %c0_6] : memref<6x288xf32, #tpu.memory_space<vmem>>, vector<6x288xf32>
    %cst = arith.constant dense<0.000000e+00> : vector<8x288xf32>
    %20 = tpu.matmul %18, %19, %cst {dimension_numbers = #tpu.dot_dimension_numbers<[1], [0], [0], [1], [0, 0, 1, 1], [], []>} : vector<8x6xf32>, vector<6x288xf32>, vector<8x288xf32> -> vector<8x288xf32>
    %c0_7 = arith.constant 0 : index
    %c0_8 = arith.constant 0 : index
    %21 = vector.load %arg4[%c0_7, %c0_8] : memref<33x288xf32, #tpu.memory_space<vmem>>, vector<33x288xf32>
    %cst_9 = arith.constant dense<0.000000e+00> : vector<8x288xf32>
    %22 = tpu.matmul %17, %21, %cst_9 {dimension_numbers = #tpu.dot_dimension_numbers<[1], [0], [0], [1], [0, 0, 1, 1], [], []>} : vector<8x33xf32>, vector<33x288xf32>, vector<8x288xf32> -> vector<8x288xf32>
    %23 = arith.addf %20, %22 : vector<8x288xf32>
    %c0_10 = arith.constant 0 : index
    %c0_11 = arith.constant 0 : index
    %24 = vector.load %arg5[%c0_10, %c0_11] : memref<1x288xf32, #tpu.memory_space<vmem>>, vector<1x288xf32>
    %25 = vector.broadcast %24 : vector<1x288xf32> to vector<8x288xf32>
    %26 = arith.addf %23, %25 : vector<8x288xf32>
    %c0_12 = arith.constant 0 : index
    %c0_13 = arith.constant 0 : index
    %27 = vector.load %arg6[%c0_12, %c0_13] : memref<8x288xf32, #tpu.memory_space<vmem>>, vector<8x288xf32>
    tpu.vector_store %arg6[%c0_12, %c0_13], %26 {strides = array<i32>} : memref<8x288xf32, #tpu.memory_space<vmem>>, vector<8x288xf32>,
    return
  }
  func.func @transform_0(%arg0: i32) -> (i32, i32) {
    %c0_i32 = arith.constant 0 : i32
    %c0_i32_0 = arith.constant 0 : i32
    return %arg0, %c0_i32 : i32, i32
  }
  func.func @transform_1(%arg0: i32) -> (i32, i32) {
    %c0_i32 = arith.constant 0 : i32
    %c0_i32_0 = arith.constant 0 : i32
    return %arg0, %c0_i32 : i32, i32
  }
  func.func @transform_2(%arg0: i32) -> (i32, i32) {
    %c0_i32 = arith.constant 0 : i32
    %c0_i32_0 = arith.constant 0 : i32
    %c0_i32_1 = arith.constant 0 : i32
    return %c0_i32, %c0_i32_0 : i32, i32
  }
  func.func @transform_3(%arg0: i32) -> (i32, i32) {
    %c0_i32 = arith.constant 0 : i32
    %c0_i32_0 = arith.constant 0 : i32
    %c0_i32_1 = arith.constant 0 : i32
    return %c0_i32, %c0_i32_0 : i32, i32
  }
  func.func @transform_4(%arg0: i32) -> (i32, i32) {
    %c0_i32 = arith.constant 0 : i32
    %c0_i32_0 = arith.constant 0 : i32
    %c0_i32_1 = arith.constant 0 : i32
    return %c0_i32, %c0_i32_0 : i32, i32
  }
  func.func @transform_5(%arg0: i32) -> (i32, i32) {
    %c0_i32 = arith.constant 0 : i32
    %c0_i32_0 = arith.constant 0 : i32
    return %arg0, %c0_i32 : i32, i32
  }
}

</mosaic_0001>

<bundles_post_ra>
// kernel: tpu_custom_call.1
= control target key start
LH: loop header
LB: loop body
LE: loop exit
PB: predicated region body
PF: predicated region fallthrough
CT: control target
= control target key end

     0   :  { %10 = vsyncpa [#allocation3], 0  ;;  %s898_s0 = inlined_call_operand.vmem [shape: f32[16,6], index: 0, kind: input, shape index: {}]   ;;  %s899_s1 = inlined_call_operand.vmem [shape: s32[16,3], index: 1, kind: input, shape index: {}]   ;;  %s900_s2 = inlined_call_operand.vmem [shape: f32[6,288], index: 2, kind: input, shape index: {}]   ;;  %s901_s3 = inlined_call_operand.hbm [shape: f32[33,288], index: 3, kind: input, shape index: {}]   ;;  %s902_s4 = inlined_call_operand.vmem [shape: f32[1,288], index: 4, kind: input, shape index: {}]   ;;  %s903_s5 = inlined_call_operand.hbm [shape: f32[16,288], index: 5, kind: output, shape index: {}]  }
   0x1   :  { %11 = vsyncpa [#allocation4], 0 }
   0x2   :  { %13 = vsyncpa [#allocation4 + $0x1], 0  ;;  %s782_s18 = smov 0   ;;  %s784_s19 = smov 0  }
   0x3   :  { %s786_s20 = smov 0   ;;  %s788_s21 = smov 0  }
   0x4 LB: > { %s803_s22 = sadd.s32 4294967295, %s743_s21   ;;  %s559_s23 = sadd.s32 4294967294, %s743_s21   ;;  %s743_s21 = sphi %s788_s21, %s909_s21   ;;  %s739_s20 = sphi %s786_s20, %s908_s20   ;;  %s735_s19 = sphi %s784_s19, %s907_s19   ;;  %s731_s18 = sphi %s782_s18, %s906_s18  }
   0x5   : > { %s807_s24 = sadd.s32 1, %s743_s21   ;;  %s141_s25 = sadd.s32 1, %s739_s20 }
   0x6   : > { %s138_s26 = ssub.s32 %s743_s21, %s807_s24  ;;  %p151_p0 = scmp.ne.s32.totalorder %s739_s20, %s735_s19 }
   0x7   : > { %p139_p1 = scmp.eq.s32.totalorder %s138_s26, 0  ;;  %p152_p2 = scmp.eq.s32.totalorder %s803_s22, 1 }
   0x8   : > { %p157_p3 = scmp.ne.s32.totalorder %s735_s19, %s731_s18  ;;  %p158_p4 = scmp.eq.s32.totalorder %s559_s23, 1 }
   0x9   : > { %s818_s27 = scalar_select %p139_p1, %s739_s20, %s141_s25  }
   0xa   : > { %p820_p5 = por %p152_p2, %p151_p0  ;;  %p824_p6 = por %p158_p4, %p157_p3 }
   0xb   : > { %p560_p7 = scmp.ge.s32.totalorder %s743_s21, 1  ;;  %p165_p8 = scmp.lt.s32.totalorder %s743_s21, 3 }
   0xc   : > { %p601_p9 = scmp.eq.s32.totalorder %s803_s22, 0  ;;  %s179_s7 = sshll.u32 %s901_s3, 4  ;;  %s180_s7 = int_to_ptr.hbm [resolvable:$true] %s179_s7 }
   0xd   : > { %p166_p10 = pnand %p560_p7, %p165_p8  ;;  %s745_s8 = smov [#allocation2]  }
   0xe   : > { %s181_s9 = sshll.u32 %s745_s8, 4  ;;  %s746_s10 = smov 384   ;;  %s182_s9 = int_to_ptr.vmem [resolvable:$true] %s181_s9 }
   0xf   : > { %p593_p11 = pneg %p166_p10  ;;  %s747_s11 = smov 24  }
  0x10   : > { %214 = sbr.rel (%p166_p10) target bundleno = 300 (0x12c), region = 40 }
  0x11   : > { %p594_p12 = pnand %p601_p9, %p593_p11 }
  0x13   : > { %596 = dma.hbm_to_vmem [thread:$0]  (!%p594_p12), %s180_s7, 1920, %s182_s9, [#allocation3], %s746_s10, %s746_s10, %s747_s11  }
  0x15   : > { %722 = dma.done.wait (%p601_p9), [#allocation3], 1920  }
  0x16   : > { %724 = vsyncadd (%p601_p9), [#allocation3], 4294965376  ;;  %p246_p13 = scmp.lt.s32.totalorder %s803_s22, 1  ;;  %v748_v0 = vmov 0   ;;  %v749_v1 = vmov 2   ;;  %v750_v3 = vmov 1   ;;  %v254_v23 = vlaneseq }
  0x17   : > { %643 = vset.pattern.permute.xlu0 %v748_v0  ;;  %645 = vset.pattern.permute.xlu1 %v749_v1  ;;  %v278_v4 = vld [vmem:[%s900_s2] sm:$0x3f]  ;;  %vm374_vm0 = vcmask 1045504   ;;  %vm370_vm1 = vcmask 48128   ;;  %vm300_vm2 = vcmask 1040384   ;;  %v290_v8 = vld [vmem:[#allocation2 + $0x48] sm:$0xff] }
  0x18   : > { %s247_s12 = scalar_select %p246_p13, %s803_s22, 1  ;;  %576 = vmatpush.msk.msra.mxu3 %vm374_vm0, %v278_v4  ;;  %v293_v6 = vld [vmem:[#allocation2 + $0x60] sm:$0x1]  ;;  %v294_v7 = vld [vmem:[#allocation2 + $0x68] sm:$0x1]  ;;  %v291_v10 = vld [vmem:[#allocation2 + $0x50] sm:$0xff] }
  0x19   : > { %570 = vmatpush.msk.msra.mxu0 %vm300_vm2, %v293_v6  ;;  %572 = vmatpush.msk.msra.mxu1 %vm300_vm2, %v294_v7  ;;  %v295_v9 = vld [vmem:[#allocation2 + $0x70] sm:$0x1]  ;;  %v292_v11 = vld [vmem:[#allocation2 + $0x58] sm:$0xff]  ;;  %v279_v12 = vld [vmem:[%s900_s2 + $0x8] sm:$0x3f]  ;;  %v255_v25 = vand.u32 127, %v254_v23 }
  0x1a   : > { %s565_s13 = sshll.u32 %s247_s12, 3  ;;  %574 = vmatpush.msk.msra.mxu2 %vm300_vm2, %v295_v9  ;;  %578 = vmatpush.msk.msrb.mxu3 %vm374_vm0, %v279_v12  ;;  %v287_v13 = vld [vmem:[#allocation2 + $0x30] sm:$0xff]  ;;  %v288_v14 = vld [vmem:[#allocation2 + $0x38] sm:$0xff]  ;;  %v289_v15 = vld [vmem:[#allocation2 + $0x40] sm:$0xff]  ;;  %v751_v28 = vmov 0.0   ;;  %vm296_vm6 = vcmask 269312  }
  0x1b   : > { %s253_s16 = scalar_lea.vmem %s899_s1, %s565_s13  ;;  %s249_s25 = scalar_lea.vmem %s898_s0, %s565_s13  ;;  %322 = vmatpush.msra.mxu0 %v290_v8  ;;  %342 = vmatpush.msra.mxu1 %v291_v10  ;;  %v284_v16 = vld [vmem:[#allocation2 + $0x18] sm:$0xff]  ;;  %v285_v17 = vld [vmem:[#allocation2 + $0x20] sm:$0xff]  ;;  %v286_v18 = vld [vmem:[#allocation2 + $0x28] sm:$0xff]  ;;  %vm457_vm7 = vcmask 261120  }
  0x1c   : > { %v256_v2 = vld [vmem:[%s253_s16] sm:$0xff]  ;;  %362 = vmatpush.msra.mxu2 %v292_v11  ;;  %v282_v20 = vld [vmem:[#allocation2 + $0x8] sm:$0xff]  ;;  %v283_v21 = vld [vmem:[#allocation2 + $0x10] sm:$0xff]  ;;  %s243_s10 = sand.u32 1, %s735_s19   ;;  %s586_s14 = smul.u32 24, %s803_s22 }
  0x1d   : > { %258 = vperm.xlu0 %643, %v256_v2   ;;  %271 = vperm.xlu1 %645, %v256_v2   ;;  %v277_v5 = vld [vmem:[%s249_s25] sm:$0xff]  ;;  %v280_v22 = vld [vmem:[%s900_s2 + $0x10] sm:$0x3f]  ;;  %s585_s13 = smul.u32 24, %s243_s10  ;;  %s460_s22 = scalar_lea.sflag [#allocation4], %s243_s10 }
  0x1e   : > { %577 = vmatmul.msk.f32.vlgmr.msra.gmra.mxu3 %vm370_vm1, %v277_v5  ;;  %323 = vmatpush.msra.mxu0 %v287_v13  ;;  %v281_v19 = vld [vmem:[#allocation2] sm:$0xff]  ;;  %s471_s23 = scalar_lea.hbm %s903_s5, %s586_s14  ;;  %s697_s9 = scalar_lea.hbm %s903_s5, 48 }
  0x1f   : > { %343 = vmatpush.msra.mxu1 %v288_v14  ;;  %363 = vmatpush.msra.mxu2 %v289_v15  ;;  %v444_v35 = vld [vmem:[%s902_s4] sm:$0x7]  ;;  %s245_s15 = scalar_lea.vmem [#allocation5], %s585_s13  ;;  %s475_s26 = sshll.u32 %s471_s23, 4  ;;  %s476_s26 = int_to_ptr.hbm [resolvable:$true] %s475_s26 }
  0x20   : > { %324 = vmatpush.msra.mxu0 %v284_v16  ;;  %v446_v37 = vperm.slane %v444_v35, 0  ;;  %v447_v38 = vperm.slane %v444_v35, 1  ;;  %v448_v45 = vperm.slane %v444_v35, 2  ;;  %s473_s25 = sshll.u32 %s245_s15, 4  ;;  %s691_s30 = sshra.s32 %s476_s26, 4  ;;  %s474_s25 = int_to_ptr.vmem [resolvable:$true] %s473_s25  ;;  %s692_s30 = int_to_ptr.hbm [resolvable:$true] %s691_s30 }
  0x21   : > { %344 = vmatpush.msra.mxu1 %v285_v17  ;;  %364 = vmatpush.msra.mxu2 %v286_v18  ;;  %s693_s6 = scalar_lea.hbm %s692_s30, 24  ;;  %p698_p3 = scmp.lt.s32.totalorder %s692_s30, %s903_s5 }
  0x22   : > { %325 = vmatpush.msra.mxu0 %v281_v19  ;;  %p694_p0 = scmp.ne.s32.totalorder %s692_s30, %s693_s6  ;;  %p699_p4 = scmp.lt.s32.totalorder %s697_s9, %s693_s6 }
  0x23   : > { %345 = vmatpush.msra.mxu1 %v282_v20  ;;  %365 = vmatpush.msra.mxu2 %v283_v21 }
  0x24   : > { %580 = vmatpush.msk.msrb.mxu0 %vm374_vm0, %v280_v22  ;;  %p695_p1 = pnand %p694_p0, %p820_p5  ;;  %p700_p7 = por %p699_p4, %p698_p3 }
  0x25   : > { %644 = vset.pattern.permute.xlu0 %v750_v3 }
  0x26   : > { %264 = vperm.xlu0 %644, %v256_v2   ;;  %579 = vmatmul.msk.f32.vlgmr.msrb.gmra.mxu3 %vm370_vm1, %v277_v5  ;;  %p696_p2 = pneg %p695_p1 }
  0x28   : > { %p701_p8 = pnand %p700_p7, %p696_p2 }
  0x2e   : > { %646 = vset.pattern.permute.xlu0 %v749_v1 }
  0x8f   : > { %v259_v24 = vpop.permute.xlu0 %258  ;;  %v272_v26 = vpop.permute.xlu1 %271 }
  0x90   : > { %vm260_vm3 = vcmp.eq.s32.totalorder %v255_v25, %v259_v24  ;;  %vm273_vm4 = vcmp.eq.s32.totalorder %v255_v25, %v272_v26 }
  0x91   : > { %v567_v29 = vsel %vm260_vm3, 1.0, %v751_v28  ;;  %v569_v31 = vsel %vm273_vm4, 1.0, %v751_v28 }
  0x98   : > { %v265_v27 = vpop.permute.xlu0 %264 }
  0x99   : > { %vm266_vm5 = vcmp.eq.s32.totalorder %v255_v25, %v265_v27 }
  0x9a   : > { %v568_v30 = vsel %vm266_vm5, 1.0, %v751_v28 }
  0x9b   : > { %v269_v32 = vadd.f32 %v568_v30, %v567_v29 }
  0x9d   : > { %v276_v33 = vadd.f32 %v569_v31, %v269_v32 }
  0x9f   : > { %571 = vmatmul.msk.f32.vlgmr.msra.gmra.mxu0 %vm296_vm6, %v276_v33  ;;  %573 = vmatmul.msk.f32.vlgmr.msra.gmra.mxu1 %vm296_vm6, %v276_v33 }
  0xa0   : > { %575 = vmatmul.msk.f32.vlgmr.msra.gmra.mxu2 %vm296_vm6, %v276_v33 }
  0xa1   : > { %v401_v34 = vpop.f32.mrf.mxu3 }
  0xa7   : > { %581 = vmatmul.msk.f32.vlgmr.msrb.gmra.mxu0 %vm370_vm1, %v277_v5 }
  0xa9   : > { %v421_v36 = vpop.f32.mrf.mxu3 }
 0x11c   : > { %v327_v39 = vpop.f32.mrf.mxu0  ;;  %v347_v40 = vpop.f32.mrf.mxu1 }
 0x11d   : > { %v402_v41 = vadd.f32 %v401_v34, %v327_v39  ;;  %v422_v42 = vadd.f32 %v421_v36, %v347_v40 }
 0x11f   : > { %v452_v43 = vadd.f32 %v446_v37, %v402_v41  ;;  %v453_v44 = vadd.f32 %v447_v38, %v422_v42 }
 0x121   : > { %455 = vst [vmem:[%s245_s15] sm:$0xff] %v452_v43 }
 0x122   : > { %456 = vst [vmem:[%s245_s15 + $0x8] sm:$0xff] %v453_v44 }
 0x123   : > { %v367_v46 = vpop.f32.mrf.mxu2 }
 0x124   : > { %v441_v47 = vpop.f32.mrf.mxu0 }
 0x125   : > { %v442_v48 = vadd.f32 %v441_v47, %v367_v46 }
 0x127   : > { %v454_v49 = vadd.f32 %v448_v45, %v442_v48 }
 0x129   : > { %458 = vst.msk [vmem:[%s245_s15 + $0x10] sm:$0xff] %vm457_vm7, %v454_v49 }
 0x12a   : > { %704 = shalt.err (!%p701_p8)
}
 0x12b   : > { %591 = dma.vmem_to_hbm [thread:$0]  (%p820_p5), %s474_s25, 384, %s476_s26, %s460_s22  }
 0x12c PF: > { %p603_p9 = scmp.ge.s32.totalorder %s743_s21, 2  ;;  %s487_s10 = sand.u32 1, %s731_s18  }
 0x12d   : > { %s488_s13 = scalar_lea.sflag [#allocation4], %s487_s10 }
 0x12e   : > { %p598_p10 = pnand %p603_p9, %p824_p6 }
 0x130   : > { %p599_p11 = pneg %p598_p10 }
 0x132   : > { %726 = dma.done.wait (%p599_p11), %s488_s13, 384  }
 0x133   : > { %728 = vsyncadd (%p599_p11), %s488_s13, 4294966912  ;;  %p16_p12 = scmp.ge.s32.totalorder %s807_s24, 4   ;;  %s906_s18 = smov %s735_s19 }
 0x134   : > { %s907_s19 = smov %s739_s20  ;;  %s908_s20 = smov %s818_s27 }
 0x135   : > { %s909_s21 = smov %s807_s24  ;;  %18 = sbr.rel (!%p16_p12) target bundleno = 4 (0x4), region = 83 }
 0x13a   :  { %494 = vsyncpa [#allocation3], 1 }
 0x13b   :  { %496 = vsyncpa [#allocation3 + $0x1], 1 }
 0x13c   :  { %497 = vsyncpa [#allocation4], 1 }
 0x13d   :  { %499 = vsyncpa [#allocation4 + $0x1], 1 }

</bundles_post_ra>
